<compile_context>
chip_gen: v5e
topology: v5e:2x2
jax: 0.10.0
libtpu: 0.0.40
codegen_flags: <defaults>
</compile_context>

<pallas_src>
import functools

import jax
import jax.numpy as jnp
from jax.experimental import pallas as pl
from jax.experimental.pallas import tpu as pltpu

_LANES = 1024            # lane-dense last dim (multiple of 128) -> unmasked vst
_TILE_BYTES = 8 << 20    # target bytes per (rows, _LANES) tile buffer
_VMEM_LIMIT = 48 << 20   # > v5e's 16 MiB scoped default, < v7x's 64 MiB physical


def _denorm_kernel(x_ref, o_ref, *, scale, shift):
    # Compute in f32 for full mantissa, cast back on store (no-op for f32).
    o_ref[...] = (x_ref[...].astype(jnp.float32) * scale + shift).astype(o_ref.dtype)


def denormalize_mvf(x_norm, image_min=-20.0, image_max=20.0, *,
                    donate_input=False, min_pallas_elems=256 * 1024):
    """Pallas equivalent of DeNormalizeMVF.forward (any-shape elementwise)."""
    orig_shape = x_norm.shape
    orig_dtype = x_norm.dtype

    # Trace-time constants (the module's buffers are fixed at init).
    scale = float(image_max - image_min) / 2.0
    shift = float(image_max + image_min) / 2.0

    total = 1
    for d in orig_shape:
        total *= d

    # Empty or tiny input: fused XLA elementwise op beats a custom-call launch.
    if total == 0 or total < min_pallas_elems:
        return (x_norm.astype(jnp.float32) * scale + shift).astype(orig_dtype)

    itemsize = jnp.dtype(orig_dtype).itemsize
    # Sublane packing requirement per dtype: f32 -> 8, bf16 -> 16, int8 -> 32.
    sub = max(8, 32 // itemsize)

    # Lane-dense 2D view.  Pad (by < _LANES elements) only when total is not a
    # multiple of _LANES; the common image shapes need no pad/copy at all.
    rows = pl.cdiv(total, _LANES)
    padded_total = rows * _LANES
    flat = x_norm.reshape(total)
    if padded_total != total:
        flat = jnp.pad(flat, (0, padded_total - total))
    x2d = flat.reshape(rows, _LANES)

    # Dtype-aware row tile from a byte budget (multiple of the sublane pack).
    tm = max(sub, (_TILE_BYTES // (_LANES * itemsize)) // sub * sub)
    if rows <= tm:
        if rows >= 2 * sub:
            # Force >= 2 grid steps so v7x can shard DMA across both TCs.
            half = (rows + 1) // 2
            tm = ((half + sub - 1) // sub) * sub
        else:
            tm = rows  # single full-extent block (always a legal block shape)
    grid = (pl.cdiv(rows, tm),)  # ragged tail block is masked by Pallas

    kernel = functools.partial(_denorm_kernel, scale=scale, shift=shift)

    out2d = pl.pallas_call(
        kernel,
        out_shape=jax.ShapeDtypeStruct((rows, _LANES), orig_dtype),
        grid=grid,
        in_specs=[pl.BlockSpec((tm, _LANES), lambda i: (i, 0))],
        out_specs=pl.BlockSpec((tm, _LANES), lambda i: (i, 0)),
        input_output_aliases={0: 0} if donate_input else {},
        cost_estimate=pl.CostEstimate(
            flops=2 * total,
            transcendentals=0,
            bytes_accessed=2 * total * itemsize,
        ),
        compiler_params=pltpu.CompilerParams(
            dimension_semantics=("parallel",),
            vmem_limit_bytes=_VMEM_LIMIT,
        ),
    )(x2d)

    out = out2d.reshape(padded_total)
    if padded_total != total:
        out = out[:total]
    return out.reshape(orig_shape)


if __name__ == "__main__":
    scale = (20.0 - (-20.0)) / 2.0
    shift = (20.0 + (-20.0)) / 2.0

    # (1) Small NCHW tensor (total % 1024 == 0 -> zero-copy Pallas path).
    x = jax.random.normal(jax.random.PRNGKey(0), (2, 4, 16, 16), dtype=jnp.float32)
    out = jax.block_until_ready(denormalize_mvf(x, min_pallas_elems=0))
    ref = x * scale + shift
    assert out.shape == x.shape and out.dtype == x.dtype
    assert jnp.allclose(out, ref, atol=1e-5, rtol=1e-5), "mismatch (aligned path)"

    # (2) Ragged size (exercises the pad-to-_LANES tail path).
    x2 = jax.random.normal(jax.random.PRNGKey(0), (3, 5, 7, 11), dtype=jnp.float32)
    out2 = jax.block_until_ready(denormalize_mvf(x2, min_pallas_elems=0))
    ref2 = x2 * scale + shift
    assert out2.shape == x2.shape and out2.dtype == x2.dtype
    assert jnp.allclose(out2, ref2, atol=1e-5, rtol=1e-5), "mismatch (ragged path)"

    # (3) Default tiny-input fallback (pure fused XLA elementwise).
    out3 = jax.block_until_ready(denormalize_mvf(x))
    assert jnp.allclose(out3, ref, atol=1e-5, rtol=1e-5), "mismatch (fallback path)"

    print("KERNEL_OK")
</pallas_src>

<mosaic_0001>
module attributes {stable_mosaic.version = 11 : i64} {
  func.func @_denorm_kernel(%arg0: i32, %arg1: memref<2x1024xf32, #tpu.memory_space<vmem>>, %arg2: memref<2x1024xf32, #tpu.memory_space<vmem>>) attributes {dimension_semantics = [#tpu.dimension_semantics<parallel>], iteration_bounds = array<i64: 1>, scalar_prefetch = 0 : i64, scratch_operands = 0 : i64, tpu.core_type = #tpu.core_type<tc>, window_params = [{transform_indices = @transform_0, window_bounds = array<i64: 2, 1024>}, {transform_indices = @transform_1, window_bounds = array<i64: 2, 1024>}]} {
    %c0 = arith.constant 0 : index
    %c0_0 = arith.constant 0 : index
    %0 = vector.load %arg1[%c0, %c0_0] : memref<2x1024xf32, #tpu.memory_space<vmem>>, vector<2x1024xf32>
    %cst = arith.constant 2.000000e+01 : f32
    %1 = vector.broadcast %cst : f32 to vector<2x1024xf32>
    %2 = arith.mulf %0, %1 : vector<2x1024xf32>
    %cst_1 = arith.constant 0.000000e+00 : f32
    %3 = vector.broadcast %cst_1 : f32 to vector<2x1024xf32>
    %4 = arith.addf %2, %3 : vector<2x1024xf32>
    %c0_2 = arith.constant 0 : index
    %c0_3 = arith.constant 0 : index
    %5 = vector.load %arg2[%c0_2, %c0_3] : memref<2x1024xf32, #tpu.memory_space<vmem>>, vector<2x1024xf32>
    tpu.vector_store %arg2[%c0_2, %c0_3], %4 {strides = array<i32>} : memref<2x1024xf32, #tpu.memory_space<vmem>>, vector<2x1024xf32>,
    return
  }
  func.func @transform_0(%arg0: i32) -> (i32, i32) {
    %c0_i32 = arith.constant 0 : i32
    %c0_i32_0 = arith.constant 0 : i32
    return %arg0, %c0_i32 : i32, i32
  }
  func.func @transform_1(%arg0: i32) -> (i32, i32) {
    %c0_i32 = arith.constant 0 : i32
    %c0_i32_0 = arith.constant 0 : i32
    return %arg0, %c0_i32 : i32, i32
  }
}

</mosaic_0001>

<bundles_post_ra>
// kernel: tpu_custom_call.1
= control target key start
LH: loop header
LB: loop body
LE: loop exit
PB: predicated region body
PF: predicated region fallthrough
CT: control target
= control target key end

     0   :  { %6 = vsyncpa [#allocation3], 0  ;;  %s120_s0 = inlined_call_operand.hbm [shape: f32[2,1024], index: 0, kind: input, shape index: {}]   ;;  %s121_s1 = inlined_call_operand.hbm [shape: f32[2,1024], index: 1, kind: output, shape index: {}]  }
   0x1   :  { %7 = vsyncpa [#allocation4], 0  ;;  %s13_s8 = sshll.u32 %s120_s0, 4  ;;  %s102_s9 = smov [#allocation2]   ;;  %s14_s8 = int_to_ptr.hbm [resolvable:$true] %s13_s8 }
   0x2   :  { %s15_s10 = sshll.u32 %s102_s9, 4  ;;  %s16_s10 = int_to_ptr.vmem [resolvable:$true] %s15_s10 }
   0x3   :  { %18 = dma.hbm_to_vmem [thread:$0]  %s14_s8, 256, %s16_s10, [#allocation3]  }
   0x4   :  { %98 = dma.done.wait [#allocation3], 256  }
   0x5   :  { %99 = vsyncadd [#allocation3], 4294967040  ;;  %s103_s11 = smov [#allocation5]   ;;  %s38_s15 = sshll.u32 %s121_s1, 4  ;;  %v23_v0 = vld [vmem:[#allocation2] sm:$0xff]  ;;  %v24_v1 = vld [vmem:[#allocation2 + $0x8] sm:$0xff]  ;;  %s39_s15 = int_to_ptr.hbm [resolvable:$true] %s38_s15 }
   0x6   :  { %s36_s12 = sshll.u32 %s103_s11, 4  ;;  %v25_v2 = vmul.f32 20.0, %v23_v0  ;;  %v26_v3 = vmul.f32 20.0, %v24_v1  ;;  %s37_s12 = int_to_ptr.vmem [resolvable:$true] %s36_s12 }
   0x8   :  { %29 = vst [vmem:[#allocation5] sm:$0xff] %v25_v2 }
   0x9   :  { %30 = vst [vmem:[#allocation5 + $0x8] sm:$0xff] %v26_v3 }
   0xa   :  { %41 = dma.vmem_to_hbm [thread:$0]  %s37_s12, 256, %s39_s15, [#allocation4]  }
   0xb   :  { %100 = dma.done.wait [#allocation4], 256  }
   0xc   :  { %101 = vsyncadd [#allocation4], 4294967040 }
   0xd   :  { %46 = vsyncpa [#allocation3], 1 }
   0xe   :  { %47 = vsyncpa [#allocation4], 1 }

</bundles_post_ra>
